<compile_context>
chip_gen: v5e
topology: v5e:2x2
jax: 0.10.0
libtpu: 0.0.40
codegen_flags: <defaults>
</compile_context>

<pallas_src>
import functools

import jax
import jax.numpy as jnp
from jax.experimental import pallas as pl
from jax.experimental.pallas import tpu as pltpu


def _round_up(v: int, m: int) -> int:
    return ((v + m - 1) // m) * m


@functools.partial(jax.jit, static_argnames=("compute_dtype",))
def lstm_layer(x, w_ih, w_hh, b_ih, b_hh, *, compute_dtype=jnp.float32):
    """LSTMLayer.forward: y = tanh(LSTM(x)), batch_first=True.

    x: (B, T, I); w_ih: (4H, I); w_hh: (4H, H); b_ih, b_hh: (4H,).
    Returns (B, T, H) float32.  `compute_dtype` selects the MXU operand dtype
    (f32 = exact, bf16 = fast); gate math and the h/c carry stay in f32.
    """
    B, T, I = x.shape
    H = w_hh.shape[1]
    cdt = jnp.dtype(compute_dtype)
    itemsize = cdt.itemsize

    # ---- Time-block size TT from a conservative VMEM budget (fits v7x's 32 MiB
    #      scoped default); bigger TT amortizes the ~0.35us/step grid overhead. ----
    fixed_bytes = (2 * itemsize * (I * 4 * H + H * 4 * H)   # W_ih^T + W_hh^T (double-buffered)
                   + 2 * 4 * (4 * H)                        # bias (double-buffered, f32)
                   + 2 * B * H * 4)                         # h/c carry scratch (f32)
    per_step_bytes = B * (2 * I * itemsize                  # x block (double-buffered)
                          + 4 * H * itemsize                # gx staging scratch
                          + 2 * H * 4)                      # out block (double-buffered, f32)
    budget = 24 * 1024 * 1024
    if budget > fixed_bytes:
        tt_cap = max(8, ((budget - fixed_bytes) // per_step_bytes) // 8 * 8)
    else:
        tt_cap = 8
    TT = int(min(128, _round_up(T, 8), tt_cap))             # multiple of 8

    n_blocks = pl.cdiv(T, TT)
    T_pad = n_blocks * TT

    # ---- Operand prep (all tiny; no activation-sized HBM relayouts).  x is laid
    #      out time-major and flattened to 2D so the per-block input projection is
    #      a single (TT*B, I) x (I, 4H) matmul with no in-kernel reshapes. ----
    x_t = jnp.transpose(x, (1, 0, 2)).astype(cdt)            # (T, B, I); I << 4H -> cheap
    if T_pad != T:
        x_t = jnp.pad(x_t, ((0, T_pad - T), (0, 0), (0, 0)))
    x_flat = x_t.reshape(T_pad * B, I)                       # row = t*B + b (t-major)

    w_ihT = jnp.transpose(w_ih).astype(cdt)                  # (I, 4H), gate cols [i|f|g|o]
    w_hhT = jnp.transpose(w_hh).astype(cdt)                  # (H, 4H)
    bias = (b_ih + b_hh).reshape(1, 4 * H).astype(jnp.float32)

    def kernel(x_ref, wih_ref, whh_ref, bias_ref, out_ref, gx_scr, h_scr, c_scr):
        t_blk = pl.program_id(0)

        # Initialize the carried state at the start of the sequence.
        @pl.when(t_blk == 0)
        def _init():
            h_scr[...] = jnp.zeros_like(h_scr)
            c_scr[...] = jnp.zeros_like(c_scr)

        # Hoisted input projection for the whole time block: one MXU matmul,
        # bias folded in, staged in VMEM (gx never round-trips HBM).
        gx = jnp.dot(x_ref[...], wih_ref[...],
                     preferred_element_type=jnp.float32) + bias_ref[...]
        gx_scr[...] = gx.astype(gx_scr.dtype)

        whh = whh_ref[...]                       # (H, 4H) resident recurrent weights
        n_valid = T - t_blk * TT                 # valid steps in this block

        def step(t, carry):
            h, c = carry                         # f32 (B, H), carried in vregs
            # Single fused (B,H) x (H,4H) recurrent matmul per step.
            rec = jnp.dot(h.astype(whh.dtype), whh,
                          preferred_element_type=jnp.float32)
            row = pl.multiple_of(t * B, B)
            gates = gx_scr[pl.ds(row, B), :].astype(jnp.float32) + rec     # (B, 4H)
            # PyTorch gate order: i, f, g, o -- slice the fused result per gate.
            i_g = jax.nn.sigmoid(gates[:, 0 * H:1 * H])
            f_g = jax.nn.sigmoid(gates[:, 1 * H:2 * H])
            g_g = jnp.tanh(gates[:, 2 * H:3 * H])
            o_g = jax.nn.sigmoid(gates[:, 3 * H:4 * H])
            c_new = f_g * c + i_g * g_g
            h_new = o_g * jnp.tanh(c_new)
            if T_pad != T:
                # Freeze the carry on zero-padded tail steps so h/c stay valid
                # (padded output rows are sliced off by the wrapper anyway).
                keep = t < n_valid
                h_new = jnp.where(keep, h_new, h)
                c_new = jnp.where(keep, c_new, c)
            # Stream this step's activated hidden state straight to the
            # batch-first output block (no stacking / end-of-block relayout).
            out_ref[:, t, :] = jnp.tanh(h_new).astype(out_ref.dtype)
            return h_new, c_new

        h_fin, c_fin = jax.lax.fori_loop(
            0, TT, step, (h_scr[...], c_scr[...]), unroll=min(TT, 8))

        # Persist the carry for the next time block.
        h_scr[...] = h_fin
        c_scr[...] = c_fin

    vmem_needed = fixed_bytes + TT * per_step_bytes + 4 * H * 4
    vmem_limit = int(min(64 * 1024 * 1024, max(32 * 1024 * 1024, 2 * vmem_needed)))

    out = pl.pallas_call(
        kernel,
        out_shape=jax.ShapeDtypeStruct((B, T_pad, H), jnp.float32),
        grid_spec=pltpu.PrefetchScalarGridSpec(
            num_scalar_prefetch=0,
            grid=(n_blocks,),
            in_specs=[
                # Streamed x time block (2D, t-major rows; lane dim == full I).
                pl.BlockSpec((TT * B, I), lambda t: (t, 0)),
                # Resident weights / bias (constant index maps).
                pl.BlockSpec((I, 4 * H), lambda t: (0, 0)),
                pl.BlockSpec((H, 4 * H), lambda t: (0, 0)),
                pl.BlockSpec((1, 4 * H), lambda t: (0, 0)),
            ],
            # Batch-first output block -> no wrapper-side output transpose.
            out_specs=pl.BlockSpec((B, TT, H), lambda t: (0, t, 0)),
            scratch_shapes=[
                pltpu.VMEM((TT * B, 4 * H), cdt),      # per-block gx staging
                pltpu.VMEM((B, H), jnp.float32),       # h carry
                pltpu.VMEM((B, H), jnp.float32),       # c carry
            ],
        ),
        compiler_params=pltpu.CompilerParams(
            # The recurrence carries h/c across time blocks -> sequential grid.
            dimension_semantics=("arbitrary",),
            vmem_limit_bytes=vmem_limit,
        ),
    )(x_flat, w_ihT, w_hhT, bias)

    if T_pad != T:
        out = out[:, :T, :]
    return out


def _reference_lstm_layer(x, w_ih, w_hh, b_ih, b_hh):
    """Pure-JAX reference matching PyTorch nn.LSTM(batch_first=True) + tanh."""
    B, T, I = x.shape
    H = w_hh.shape[1]
    bias = b_ih + b_hh

    def step(carry, x_t):
        h, c = carry
        gates = x_t @ w_ih.T + h @ w_hh.T + bias
        i_g = jax.nn.sigmoid(gates[:, 0 * H:1 * H])
        f_g = jax.nn.sigmoid(gates[:, 1 * H:2 * H])
        g_g = jnp.tanh(gates[:, 2 * H:3 * H])
        o_g = jax.nn.sigmoid(gates[:, 3 * H:4 * H])
        c_new = f_g * c + i_g * g_g
        h_new = o_g * jnp.tanh(c_new)
        return (h_new, c_new), h_new

    init = (jnp.zeros((B, H), jnp.float32), jnp.zeros((B, H), jnp.float32))
    _, hs = jax.lax.scan(step, init, jnp.transpose(x, (1, 0, 2)))
    return jnp.tanh(jnp.transpose(hs, (1, 0, 2)))


if __name__ == "__main__":
    B, T, I, H = 2, 8, 4, 32

    key = jax.random.PRNGKey(0)
    k_x, k_x2, k_wih, k_whh, k_bih, k_bhh = jax.random.split(key, 6)

    # PyTorch default LSTM init: U(-1/sqrt(H), 1/sqrt(H)).
    bound = 1.0 / (H ** 0.5)
    x = jax.random.normal(k_x, (B, T, I), dtype=jnp.float32)
    w_ih = jax.random.uniform(k_wih, (4 * H, I), jnp.float32, -bound, bound)
    w_hh = jax.random.uniform(k_whh, (4 * H, H), jnp.float32, -bound, bound)
    b_ih = jax.random.uniform(k_bih, (4 * H,), jnp.float32, -bound, bound)
    b_hh = jax.random.uniform(k_bhh, (4 * H,), jnp.float32, -bound, bound)

    ref = _reference_lstm_layer(x, w_ih, w_hh, b_ih, b_hh)

    # 1) f32 path: matches the PyTorch/JAX reference tightly.
    out = lstm_layer(x, w_ih, w_hh, b_ih, b_hh)
    jax.block_until_ready(out)
    assert out.shape == (B, T, H)
    assert jnp.allclose(out, ref, atol=1e-5, rtol=1e-5)

    # 2) bf16 matmul-operand path (performance config) at a relaxed tolerance.
    out_bf16 = lstm_layer(x, w_ih, w_hh, b_ih, b_hh, compute_dtype=jnp.bfloat16)
    jax.block_until_ready(out_bf16)
    assert jnp.allclose(out_bf16, ref, atol=5e-2, rtol=5e-2)

    # 3) Longer sequence that is not a multiple of the time block: exercises the
    #    fori_loop path, time padding and the frozen-carry masking.
    T2 = 20
    x2 = jax.random.normal(k_x2, (B, T2, I), dtype=jnp.float32)
    out2 = lstm_layer(x2, w_ih, w_hh, b_ih, b_hh)
    jax.block_until_ready(out2)
    ref2 = _reference_lstm_layer(x2, w_ih, w_hh, b_ih, b_hh)
    assert out2.shape == (B, T2, H)
    assert jnp.allclose(out2, ref2, atol=1e-4, rtol=1e-4)

    print("KERNEL_OK")
</pallas_src>

<mosaic_0001>
module attributes {stable_mosaic.version = 11 : i64} {
  func.func @kernel(%arg0: i32, %arg1: memref<16x4xf32, #tpu.memory_space<vmem>>, %arg2: memref<4x128xf32, #tpu.memory_space<vmem>>, %arg3: memref<32x128xf32, #tpu.memory_space<vmem>>, %arg4: memref<1x128xf32, #tpu.memory_space<vmem>>, %arg5: memref<2x8x32xf32, #tpu.memory_space<vmem>>, %arg6: memref<16x128xf32, #tpu.memory_space<vmem>>, %arg7: memref<2x32xf32, #tpu.memory_space<vmem>>, %arg8: memref<2x32xf32, #tpu.memory_space<vmem>>) attributes {dimension_semantics = [#tpu.dimension_semantics<arbitrary>], iteration_bounds = array<i64: 1>, scalar_prefetch = 0 : i64, scratch_operands = 3 : i64, tpu.core_type = #tpu.core_type<tc>, window_params = [{transform_indices = @transform_0, window_bounds = array<i64: 16, 4>}, {pipeline_mode = #tpu.pipeline_mode<synchronous>, transform_indices = @transform_1, window_bounds = array<i64: 4, 128>}, {pipeline_mode = #tpu.pipeline_mode<synchronous>, transform_indices = @transform_2, window_bounds = array<i64: 32, 128>}, {pipeline_mode = #tpu.pipeline_mode<synchronous>, transform_indices = @transform_3, window_bounds = array<i64: 1, 128>}, {transform_indices = @transform_4, window_bounds = array<i64: 2, 8, 32>}]} {
    %c0_i32 = arith.constant 0 : i32
    %0 = arith.cmpi eq, %arg0, %c0_i32 : i32
    %1 = arith.extui %0 : i1 to i32
    %c0_i32_0 = arith.constant 0 : i32
    %2 = arith.cmpi ne, %1, %c0_i32_0 : i32
    scf.if %2 {
      %cst_83 = arith.constant 0.000000e+00 : f32
      %303 = vector.broadcast %cst_83 : f32 to vector<2x32xf32>
      %c0_84 = arith.constant 0 : index
      %c0_85 = arith.constant 0 : index
      %304 = vector.load %arg7[%c0_84, %c0_85] : memref<2x32xf32, #tpu.memory_space<vmem>>, vector<2x32xf32>
      tpu.vector_store %arg7[%c0_84, %c0_85], %303 {strides = array<i32>} : memref<2x32xf32, #tpu.memory_space<vmem>>, vector<2x32xf32>,
      %cst_86 = arith.constant 0.000000e+00 : f32
      %305 = vector.broadcast %cst_86 : f32 to vector<2x32xf32>
      %c0_87 = arith.constant 0 : index
      %c0_88 = arith.constant 0 : index
      %306 = vector.load %arg8[%c0_87, %c0_88] : memref<2x32xf32, #tpu.memory_space<vmem>>, vector<2x32xf32>
      tpu.vector_store %arg8[%c0_87, %c0_88], %305 {strides = array<i32>} : memref<2x32xf32, #tpu.memory_space<vmem>>, vector<2x32xf32>,
    } else {
    }
    %c0 = arith.constant 0 : index
    %c0_1 = arith.constant 0 : index
    %3 = vector.load %arg1[%c0, %c0_1] : memref<16x4xf32, #tpu.memory_space<vmem>>, vector<16x4xf32>
    %c0_2 = arith.constant 0 : index
    %c0_3 = arith.constant 0 : index
    %4 = vector.load %arg2[%c0_2, %c0_3] : memref<4x128xf32, #tpu.memory_space<vmem>>, vector<4x128xf32>
    %cst = arith.constant dense<0.000000e+00> : vector<16x128xf32>
    %5 = tpu.matmul %3, %4, %cst {dimension_numbers = #tpu.dot_dimension_numbers<[1], [0], [0], [1], [0, 0, 1, 1], [], []>} : vector<16x4xf32>, vector<4x128xf32>, vector<16x128xf32> -> vector<16x128xf32>
    %c0_4 = arith.constant 0 : index
    %c0_5 = arith.constant 0 : index
    %6 = vector.load %arg4[%c0_4, %c0_5] : memref<1x128xf32, #tpu.memory_space<vmem>>, vector<1x128xf32>
    %7 = vector.broadcast %6 : vector<1x128xf32> to vector<16x128xf32>
    %8 = arith.addf %5, %7 : vector<16x128xf32>
    %c0_6 = arith.constant 0 : index
    %c0_7 = arith.constant 0 : index
    %9 = vector.load %arg6[%c0_6, %c0_7] : memref<16x128xf32, #tpu.memory_space<vmem>>, vector<16x128xf32>
    tpu.vector_store %arg6[%c0_6, %c0_7], %8 {strides = array<i32>} : memref<16x128xf32, #tpu.memory_space<vmem>>, vector<16x128xf32>,
    %c0_8 = arith.constant 0 : index
    %c0_9 = arith.constant 0 : index
    %10 = vector.load %arg3[%c0_8, %c0_9] : memref<32x128xf32, #tpu.memory_space<vmem>>, vector<32x128xf32>
    %c0_10 = arith.constant 0 : index
    %c0_11 = arith.constant 0 : index
    %11 = vector.load %arg7[%c0_10, %c0_11] : memref<2x32xf32, #tpu.memory_space<vmem>>, vector<2x32xf32>
    %c0_12 = arith.constant 0 : index
    %c0_13 = arith.constant 0 : index
    %12 = vector.load %arg8[%c0_12, %c0_13] : memref<2x32xf32, #tpu.memory_space<vmem>>, vector<2x32xf32>
    %c0_i32_14 = arith.constant 0 : i32
    %cst_15 = arith.constant dense<0.000000e+00> : vector<2x128xf32>
    %13 = tpu.matmul %11, %10, %cst_15 {dimension_numbers = #tpu.dot_dimension_numbers<[1], [0], [0], [1], [0, 0, 1, 1], [], []>} : vector<2x32xf32>, vector<32x128xf32>, vector<2x128xf32> -> vector<2x128xf32>
    %c2_i32 = arith.constant 2 : i32
    %14 = arith.muli %c0_i32_14, %c2_i32 : i32
    %15 = tpu.assume_multiple %14, 2 : i32
    %16 = arith.index_cast %15 : i32 to index
    %c0_16 = arith.constant 0 : index
    %17 = vector.load %arg6[%16, %c0_16] : memref<16x128xf32, #tpu.memory_space<vmem>>, vector<2x128xf32>
    %18 = arith.addf %17, %13 : vector<2x128xf32>
    %19 = vector.extract_strided_slice %18 {offsets = [0, 0], sizes = [2, 32], strides = [1, 1]} : vector<2x128xf32> to vector<2x32xf32>
    %20 = arith.negf %19 : vector<2x32xf32>
    %21 = math.exp %20 : vector<2x32xf32>
    %cst_17 = arith.constant 1.000000e+00 : f32
    %22 = vector.broadcast %cst_17 : f32 to vector<2x32xf32>
    %23 = arith.addf %22, %21 : vector<2x32xf32>
    %24 = arith.divf %22, %23 : vector<2x32xf32>
    %25 = vector.extract_strided_slice %18 {offsets = [0, 32], sizes = [2, 32], strides = [1, 1]} : vector<2x128xf32> to vector<2x32xf32>
    %26 = arith.negf %25 : vector<2x32xf32>
    %27 = math.exp %26 : vector<2x32xf32>
    %cst_18 = arith.constant 1.000000e+00 : f32
    %28 = vector.broadcast %cst_18 : f32 to vector<2x32xf32>
    %29 = arith.addf %28, %27 : vector<2x32xf32>
    %30 = arith.divf %28, %29 : vector<2x32xf32>
    %31 = vector.extract_strided_slice %18 {offsets = [0, 64], sizes = [2, 32], strides = [1, 1]} : vector<2x128xf32> to vector<2x32xf32>
    %32 = math.tanh %31 : vector<2x32xf32>
    %33 = vector.extract_strided_slice %18 {offsets = [0, 96], sizes = [2, 32], strides = [1, 1]} : vector<2x128xf32> to vector<2x32xf32>
    %34 = arith.negf %33 : vector<2x32xf32>
    %35 = math.exp %34 : vector<2x32xf32>
    %cst_19 = arith.constant 1.000000e+00 : f32
    %36 = vector.broadcast %cst_19 : f32 to vector<2x32xf32>
    %37 = arith.addf %36, %35 : vector<2x32xf32>
    %38 = arith.divf %36, %37 : vector<2x32xf32>
    %39 = arith.mulf %30, %12 : vector<2x32xf32>
    %40 = arith.mulf %24, %32 : vector<2x32xf32>
    %41 = arith.addf %39, %40 : vector<2x32xf32>
    %42 = math.tanh %41 : vector<2x32xf32>
    %43 = arith.mulf %38, %42 : vector<2x32xf32>
    %44 = math.tanh %43 : vector<2x32xf32>
    %c0_20 = arith.constant 0 : index
    %45 = arith.index_cast %c0_i32_14 : i32 to index
    %c0_21 = arith.constant 0 : index
    %46 = vector.load %arg5[%c0_20, %45, %c0_21] : memref<2x8x32xf32, #tpu.memory_space<vmem>>, vector<2x1x32xf32>
    %47 = vector.shape_cast %46 : vector<2x1x32xf32> to vector<2x32xf32>
    %48 = vector.shape_cast %44 : vector<2x32xf32> to vector<2x1x32xf32>
    tpu.vector_store %arg5[%c0_20, %45, %c0_21], %48 {strides = array<i32>} : memref<2x8x32xf32, #tpu.memory_space<vmem>>, vector<2x1x32xf32>,
    %c1_i32 = arith.constant 1 : i32
    %cst_22 = arith.constant dense<0.000000e+00> : vector<2x128xf32>
    %49 = tpu.matmul %43, %10, %cst_22 {dimension_numbers = #tpu.dot_dimension_numbers<[1], [0], [0], [1], [0, 0, 1, 1], [], []>} : vector<2x32xf32>, vector<32x128xf32>, vector<2x128xf32> -> vector<2x128xf32>
    %c2_i32_23 = arith.constant 2 : i32
    %50 = arith.muli %c1_i32, %c2_i32_23 : i32
    %51 = tpu.assume_multiple %50, 2 : i32
    %52 = arith.index_cast %51 : i32 to index
    %c0_24 = arith.constant 0 : index
    %53 = vector.load %arg6[%52, %c0_24] : memref<16x128xf32, #tpu.memory_space<vmem>>, vector<2x128xf32>
    %54 = arith.addf %53, %49 : vector<2x128xf32>
    %55 = vector.extract_strided_slice %54 {offsets = [0, 0], sizes = [2, 32], strides = [1, 1]} : vector<2x128xf32> to vector<2x32xf32>
    %56 = arith.negf %55 : vector<2x32xf32>
    %57 = math.exp %56 : vector<2x32xf32>
    %cst_25 = arith.constant 1.000000e+00 : f32
    %58 = vector.broadcast %cst_25 : f32 to vector<2x32xf32>
    %59 = arith.addf %58, %57 : vector<2x32xf32>
    %60 = arith.divf %58, %59 : vector<2x32xf32>
    %61 = vector.extract_strided_slice %54 {offsets = [0, 32], sizes = [2, 32], strides = [1, 1]} : vector<2x128xf32> to vector<2x32xf32>
    %62 = arith.negf %61 : vector<2x32xf32>
    %63 = math.exp %62 : vector<2x32xf32>
    %cst_26 = arith.constant 1.000000e+00 : f32
    %64 = vector.broadcast %cst_26 : f32 to vector<2x32xf32>
    %65 = arith.addf %64, %63 : vector<2x32xf32>
    %66 = arith.divf %64, %65 : vector<2x32xf32>
    %67 = vector.extract_strided_slice %54 {offsets = [0, 64], sizes = [2, 32], strides = [1, 1]} : vector<2x128xf32> to vector<2x32xf32>
    %68 = math.tanh %67 : vector<2x32xf32>
    %69 = vector.extract_strided_slice %54 {offsets = [0, 96], sizes = [2, 32], strides = [1, 1]} : vector<2x128xf32> to vector<2x32xf32>
    %70 = arith.negf %69 : vector<2x32xf32>
    %71 = math.exp %70 : vector<2x32xf32>
    %cst_27 = arith.constant 1.000000e+00 : f32
    %72 = vector.broadcast %cst_27 : f32 to vector<2x32xf32>
    %73 = arith.addf %72, %71 : vector<2x32xf32>
    %74 = arith.divf %72, %73 : vector<2x32xf32>
    %75 = arith.mulf %66, %41 : vector<2x32xf32>
    %76 = arith.mulf %60, %68 : vector<2x32xf32>
    %77 = arith.addf %75, %76 : vector<2x32xf32>
    %78 = math.tanh %77 : vector<2x32xf32>
    %79 = arith.mulf %74, %78 : vector<2x32xf32>
    %80 = math.tanh %79 : vector<2x32xf32>
    %c0_28 = arith.constant 0 : index
    %81 = arith.index_cast %c1_i32 : i32 to index
    %c0_29 = arith.constant 0 : index
    %82 = vector.load %arg5[%c0_28, %81, %c0_29] : memref<2x8x32xf32, #tpu.memory_space<vmem>>, vector<2x1x32xf32>
    %83 = vector.shape_cast %82 : vector<2x1x32xf32> to vector<2x32xf32>
    %84 = vector.shape_cast %80 : vector<2x32xf32> to vector<2x1x32xf32>
    tpu.vector_store %arg5[%c0_28, %81, %c0_29], %84 {strides = array<i32>} : memref<2x8x32xf32, #tpu.memory_space<vmem>>, vector<2x1x32xf32>,
    %c2_i32_30 = arith.constant 2 : i32
    %cst_31 = arith.constant dense<0.000000e+00> : vector<2x128xf32>
    %85 = tpu.matmul %79, %10, %cst_31 {dimension_numbers = #tpu.dot_dimension_numbers<[1], [0], [0], [1], [0, 0, 1, 1], [], []>} : vector<2x32xf32>, vector<32x128xf32>, vector<2x128xf32> -> vector<2x128xf32>
    %c2_i32_32 = arith.constant 2 : i32
    %86 = arith.muli %c2_i32_30, %c2_i32_32 : i32
    %87 = tpu.assume_multiple %86, 2 : i32
    %88 = arith.index_cast %87 : i32 to index
    %c0_33 = arith.constant 0 : index
    %89 = vector.load %arg6[%88, %c0_33] : memref<16x128xf32, #tpu.memory_space<vmem>>, vector<2x128xf32>
    %90 = arith.addf %89, %85 : vector<2x128xf32>
    %91 = vector.extract_strided_slice %90 {offsets = [0, 0], sizes = [2, 32], strides = [1, 1]} : vector<2x128xf32> to vector<2x32xf32>
    %92 = arith.negf %91 : vector<2x32xf32>
    %93 = math.exp %92 : vector<2x32xf32>
    %cst_34 = arith.constant 1.000000e+00 : f32
    %94 = vector.broadcast %cst_34 : f32 to vector<2x32xf32>
    %95 = arith.addf %94, %93 : vector<2x32xf32>
    %96 = arith.divf %94, %95 : vector<2x32xf32>
    %97 = vector.extract_strided_slice %90 {offsets = [0, 32], sizes = [2, 32], strides = [1, 1]} : vector<2x128xf32> to vector<2x32xf32>
    %98 = arith.negf %97 : vector<2x32xf32>
    %99 = math.exp %98 : vector<2x32xf32>
    %cst_35 = arith.constant 1.000000e+00 : f32
    %100 = vector.broadcast %cst_35 : f32 to vector<2x32xf32>
    %101 = arith.addf %100, %99 : vector<2x32xf32>
    %102 = arith.divf %100, %101 : vector<2x32xf32>
    %103 = vector.extract_strided_slice %90 {offsets = [0, 64], sizes = [2, 32], strides = [1, 1]} : vector<2x128xf32> to vector<2x32xf32>
    %104 = math.tanh %103 : vector<2x32xf32>
    %105 = vector.extract_strided_slice %90 {offsets = [0, 96], sizes = [2, 32], strides = [1, 1]} : vector<2x128xf32> to vector<2x32xf32>
    %106 = arith.negf %105 : vector<2x32xf32>
    %107 = math.exp %106 : vector<2x32xf32>
    %cst_36 = arith.constant 1.000000e+00 : f32
    %108 = vector.broadcast %cst_36 : f32 to vector<2x32xf32>
    %109 = arith.addf %108, %107 : vector<2x32xf32>
    %110 = arith.divf %108, %109 : vector<2x32xf32>
    %111 = arith.mulf %102, %77 : vector<2x32xf32>
    %112 = arith.mulf %96, %104 : vector<2x32xf32>
    %113 = arith.addf %111, %112 : vector<2x32xf32>
    %114 = math.tanh %113 : vector<2x32xf32>
    %115 = arith.mulf %110, %114 : vector<2x32xf32>
    %116 = math.tanh %115 : vector<2x32xf32>
    %c0_37 = arith.constant 0 : index
    %117 = arith.index_cast %c2_i32_30 : i32 to index
    %c0_38 = arith.constant 0 : index
    %118 = vector.load %arg5[%c0_37, %117, %c0_38] : memref<2x8x32xf32, #tpu.memory_space<vmem>>, vector<2x1x32xf32>
    %119 = vector.shape_cast %118 : vector<2x1x32xf32> to vector<2x32xf32>
    %120 = vector.shape_cast %116 : vector<2x32xf32> to vector<2x1x32xf32>
    tpu.vector_store %arg5[%c0_37, %117, %c0_38], %120 {strides = array<i32>} : memref<2x8x32xf32, #tpu.memory_space<vmem>>, vector<2x1x32xf32>,
    %c3_i32 = arith.constant 3 : i32
    %cst_39 = arith.constant dense<0.000000e+00> : vector<2x128xf32>
    %121 = tpu.matmul %115, %10, %cst_39 {dimension_numbers = #tpu.dot_dimension_numbers<[1], [0], [0], [1], [0, 0, 1, 1], [], []>} : vector<2x32xf32>, vector<32x128xf32>, vector<2x128xf32> -> vector<2x128xf32>
    %c2_i32_40 = arith.constant 2 : i32
    %122 = arith.muli %c3_i32, %c2_i32_40 : i32
    %123 = tpu.assume_multiple %122, 2 : i32
    %124 = arith.index_cast %123 : i32 to index
    %c0_41 = arith.constant 0 : index
    %125 = vector.load %arg6[%124, %c0_41] : memref<16x128xf32, #tpu.memory_space<vmem>>, vector<2x128xf32>
    %126 = arith.addf %125, %121 : vector<2x128xf32>
    %127 = vector.extract_strided_slice %126 {offsets = [0, 0], sizes = [2, 32], strides = [1, 1]} : vector<2x128xf32> to vector<2x32xf32>
    %128 = arith.negf %127 : vector<2x32xf32>
    %129 = math.exp %128 : vector<2x32xf32>
    %cst_42 = arith.constant 1.000000e+00 : f32
    %130 = vector.broadcast %cst_42 : f32 to vector<2x32xf32>
    %131 = arith.addf %130, %129 : vector<2x32xf32>
    %132 = arith.divf %130, %131 : vector<2x32xf32>
    %133 = vector.extract_strided_slice %126 {offsets = [0, 32], sizes = [2, 32], strides = [1, 1]} : vector<2x128xf32> to vector<2x32xf32>
    %134 = arith.negf %133 : vector<2x32xf32>
    %135 = math.exp %134 : vector<2x32xf32>
    %cst_43 = arith.constant 1.000000e+00 : f32
    %136 = vector.broadcast %cst_43 : f32 to vector<2x32xf32>
    %137 = arith.addf %136, %135 : vector<2x32xf32>
    %138 = arith.divf %136, %137 : vector<2x32xf32>
    %139 = vector.extract_strided_slice %126 {offsets = [0, 64], sizes = [2, 32], strides = [1, 1]} : vector<2x128xf32> to vector<2x32xf32>
    %140 = math.tanh %139 : vector<2x32xf32>
    %141 = vector.extract_strided_slice %126 {offsets = [0, 96], sizes = [2, 32], strides = [1, 1]} : vector<2x128xf32> to vector<2x32xf32>
    %142 = arith.negf %141 : vector<2x32xf32>
    %143 = math.exp %142 : vector<2x32xf32>
    %cst_44 = arith.constant 1.000000e+00 : f32
    %144 = vector.broadcast %cst_44 : f32 to vector<2x32xf32>
    %145 = arith.addf %144, %143 : vector<2x32xf32>
    %146 = arith.divf %144, %145 : vector<2x32xf32>
    %147 = arith.mulf %138, %113 : vector<2x32xf32>
    %148 = arith.mulf %132, %140 : vector<2x32xf32>
    %149 = arith.addf %147, %148 : vector<2x32xf32>
    %150 = math.tanh %149 : vector<2x32xf32>
    %151 = arith.mulf %146, %150 : vector<2x32xf32>
    %152 = math.tanh %151 : vector<2x32xf32>
    %c0_45 = arith.constant 0 : index
    %153 = arith.index_cast %c3_i32 : i32 to index
    %c0_46 = arith.constant 0 : index
    %154 = vector.load %arg5[%c0_45, %153, %c0_46] : memref<2x8x32xf32, #tpu.memory_space<vmem>>, vector<2x1x32xf32>
    %155 = vector.shape_cast %154 : vector<2x1x32xf32> to vector<2x32xf32>
    %156 = vector.shape_cast %152 : vector<2x32xf32> to vector<2x1x32xf32>
    tpu.vector_store %arg5[%c0_45, %153, %c0_46], %156 {strides = array<i32>} : memref<2x8x32xf32, #tpu.memory_space<vmem>>, vector<2x1x32xf32>,
    %c4_i32 = arith.constant 4 : i32
    %cst_47 = arith.constant dense<0.000000e+00> : vector<2x128xf32>
    %157 = tpu.matmul %151, %10, %cst_47 {dimension_numbers = #tpu.dot_dimension_numbers<[1], [0], [0], [1], [0, 0, 1, 1], [], []>} : vector<2x32xf32>, vector<32x128xf32>, vector<2x128xf32> -> vector<2x128xf32>
    %c2_i32_48 = arith.constant 2 : i32
    %158 = arith.muli %c4_i32, %c2_i32_48 : i32
    %159 = tpu.assume_multiple %158, 2 : i32
    %160 = arith.index_cast %159 : i32 to index
    %c0_49 = arith.constant 0 : index
    %161 = vector.load %arg6[%160, %c0_49] : memref<16x128xf32, #tpu.memory_space<vmem>>, vector<2x128xf32>
    %162 = arith.addf %161, %157 : vector<2x128xf32>
    %163 = vector.extract_strided_slice %162 {offsets = [0, 0], sizes = [2, 32], strides = [1, 1]} : vector<2x128xf32> to vector<2x32xf32>
    %164 = arith.negf %163 : vector<2x32xf32>
    %165 = math.exp %164 : vector<2x32xf32>
    %cst_50 = arith.constant 1.000000e+00 : f32
    %166 = vector.broadcast %cst_50 : f32 to vector<2x32xf32>
    %167 = arith.addf %166, %165 : vector<2x32xf32>
    %168 = arith.divf %166, %167 : vector<2x32xf32>
    %169 = vector.extract_strided_slice %162 {offsets = [0, 32], sizes = [2, 32], strides = [1, 1]} : vector<2x128xf32> to vector<2x32xf32>
    %170 = arith.negf %169 : vector<2x32xf32>
    %171 = math.exp %170 : vector<2x32xf32>
    %cst_51 = arith.constant 1.000000e+00 : f32
    %172 = vector.broadcast %cst_51 : f32 to vector<2x32xf32>
    %173 = arith.addf %172, %171 : vector<2x32xf32>
    %174 = arith.divf %172, %173 : vector<2x32xf32>
    %175 = vector.extract_strided_slice %162 {offsets = [0, 64], sizes = [2, 32], strides = [1, 1]} : vector<2x128xf32> to vector<2x32xf32>
    %176 = math.tanh %175 : vector<2x32xf32>
    %177 = vector.extract_strided_slice %162 {offsets = [0, 96], sizes = [2, 32], strides = [1, 1]} : vector<2x128xf32> to vector<2x32xf32>
    %178 = arith.negf %177 : vector<2x32xf32>
    %179 = math.exp %178 : vector<2x32xf32>
    %cst_52 = arith.constant 1.000000e+00 : f32
    %180 = vector.broadcast %cst_52 : f32 to vector<2x32xf32>
    %181 = arith.addf %180, %179 : vector<2x32xf32>
    %182 = arith.divf %180, %181 : vector<2x32xf32>
    %183 = arith.mulf %174, %149 : vector<2x32xf32>
    %184 = arith.mulf %168, %176 : vector<2x32xf32>
    %185 = arith.addf %183, %184 : vector<2x32xf32>
    %186 = math.tanh %185 : vector<2x32xf32>
    %187 = arith.mulf %182, %186 : vector<2x32xf32>
    %188 = math.tanh %187 : vector<2x32xf32>
    %c0_53 = arith.constant 0 : index
    %189 = arith.index_cast %c4_i32 : i32 to index
    %c0_54 = arith.constant 0 : index
    %190 = vector.load %arg5[%c0_53, %189, %c0_54] : memref<2x8x32xf32, #tpu.memory_space<vmem>>, vector<2x1x32xf32>
    %191 = vector.shape_cast %190 : vector<2x1x32xf32> to vector<2x32xf32>
    %192 = vector.shape_cast %188 : vector<2x32xf32> to vector<2x1x32xf32>
    tpu.vector_store %arg5[%c0_53, %189, %c0_54], %192 {strides = array<i32>} : memref<2x8x32xf32, #tpu.memory_space<vmem>>, vector<2x1x32xf32>,
    %c5_i32 = arith.constant 5 : i32
    %cst_55 = arith.constant dense<0.000000e+00> : vector<2x128xf32>
    %193 = tpu.matmul %187, %10, %cst_55 {dimension_numbers = #tpu.dot_dimension_numbers<[1], [0], [0], [1], [0, 0, 1, 1], [], []>} : vector<2x32xf32>, vector<32x128xf32>, vector<2x128xf32> -> vector<2x128xf32>
    %c2_i32_56 = arith.constant 2 : i32
    %194 = arith.muli %c5_i32, %c2_i32_56 : i32
    %195 = tpu.assume_multiple %194, 2 : i32
    %196 = arith.index_cast %195 : i32 to index
    %c0_57 = arith.constant 0 : index
    %197 = vector.load %arg6[%196, %c0_57] : memref<16x128xf32, #tpu.memory_space<vmem>>, vector<2x128xf32>
    %198 = arith.addf %197, %193 : vector<2x128xf32>
    %199 = vector.extract_strided_slice %198 {offsets = [0, 0], sizes = [2, 32], strides = [1, 1]} : vector<2x128xf32> to vector<2x32xf32>
    %200 = arith.negf %199 : vector<2x32xf32>
    %201 = math.exp %200 : vector<2x32xf32>
    %cst_58 = arith.constant 1.000000e+00 : f32
    %202 = vector.broadcast %cst_58 : f32 to vector<2x32xf32>
    %203 = arith.addf %202, %201 : vector<2x32xf32>
    %204 = arith.divf %202, %203 : vector<2x32xf32>
    %205 = vector.extract_strided_slice %198 {offsets = [0, 32], sizes = [2, 32], strides = [1, 1]} : vector<2x128xf32> to vector<2x32xf32>
    %206 = arith.negf %205 : vector<2x32xf32>
    %207 = math.exp %206 : vector<2x32xf32>
    %cst_59 = arith.constant 1.000000e+00 : f32
    %208 = vector.broadcast %cst_59 : f32 to vector<2x32xf32>
    %209 = arith.addf %208, %207 : vector<2x32xf32>
    %210 = arith.divf %208, %209 : vector<2x32xf32>
    %211 = vector.extract_strided_slice %198 {offsets = [0, 64], sizes = [2, 32], strides = [1, 1]} : vector<2x128xf32> to vector<2x32xf32>
    %212 = math.tanh %211 : vector<2x32xf32>
    %213 = vector.extract_strided_slice %198 {offsets = [0, 96], sizes = [2, 32], strides = [1, 1]} : vector<2x128xf32> to vector<2x32xf32>
    %214 = arith.negf %213 : vector<2x32xf32>
    %215 = math.exp %214 : vector<2x32xf32>
    %cst_60 = arith.constant 1.000000e+00 : f32
    %216 = vector.broadcast %cst_60 : f32 to vector<2x32xf32>
    %217 = arith.addf %216, %215 : vector<2x32xf32>
    %218 = arith.divf %216, %217 : vector<2x32xf32>
    %219 = arith.mulf %210, %185 : vector<2x32xf32>
    %220 = arith.mulf %204, %212 : vector<2x32xf32>
    %221 = arith.addf %219, %220 : vector<2x32xf32>
    %222 = math.tanh %221 : vector<2x32xf32>
    %223 = arith.mulf %218, %222 : vector<2x32xf32>
    %224 = math.tanh %223 : vector<2x32xf32>
    %c0_61 = arith.constant 0 : index
    %225 = arith.index_cast %c5_i32 : i32 to index
    %c0_62 = arith.constant 0 : index
    %226 = vector.load %arg5[%c0_61, %225, %c0_62] : memref<2x8x32xf32, #tpu.memory_space<vmem>>, vector<2x1x32xf32>
    %227 = vector.shape_cast %226 : vector<2x1x32xf32> to vector<2x32xf32>
    %228 = vector.shape_cast %224 : vector<2x32xf32> to vector<2x1x32xf32>
    tpu.vector_store %arg5[%c0_61, %225, %c0_62], %228 {strides = array<i32>} : memref<2x8x32xf32, #tpu.memory_space<vmem>>, vector<2x1x32xf32>,
    %c6_i32 = arith.constant 6 : i32
    %cst_63 = arith.constant dense<0.000000e+00> : vector<2x128xf32>
    %229 = tpu.matmul %223, %10, %cst_63 {dimension_numbers = #tpu.dot_dimension_numbers<[1], [0], [0], [1], [0, 0, 1, 1], [], []>} : vector<2x32xf32>, vector<32x128xf32>, vector<2x128xf32> -> vector<2x128xf32>
    %c2_i32_64 = arith.constant 2 : i32
    %230 = arith.muli %c6_i32, %c2_i32_64 : i32
    %231 = tpu.assume_multiple %230, 2 : i32
    %232 = arith.index_cast %231 : i32 to index
    %c0_65 = arith.constant 0 : index
    %233 = vector.load %arg6[%232, %c0_65] : memref<16x128xf32, #tpu.memory_space<vmem>>, vector<2x128xf32>
    %234 = arith.addf %233, %229 : vector<2x128xf32>
    %235 = vector.extract_strided_slice %234 {offsets = [0, 0], sizes = [2, 32], strides = [1, 1]} : vector<2x128xf32> to vector<2x32xf32>
    %236 = arith.negf %235 : vector<2x32xf32>
    %237 = math.exp %236 : vector<2x32xf32>
    %cst_66 = arith.constant 1.000000e+00 : f32
    %238 = vector.broadcast %cst_66 : f32 to vector<2x32xf32>
    %239 = arith.addf %238, %237 : vector<2x32xf32>
    %240 = arith.divf %238, %239 : vector<2x32xf32>
    %241 = vector.extract_strided_slice %234 {offsets = [0, 32], sizes = [2, 32], strides = [1, 1]} : vector<2x128xf32> to vector<2x32xf32>
    %242 = arith.negf %241 : vector<2x32xf32>
    %243 = math.exp %242 : vector<2x32xf32>
    %cst_67 = arith.constant 1.000000e+00 : f32
    %244 = vector.broadcast %cst_67 : f32 to vector<2x32xf32>
    %245 = arith.addf %244, %243 : vector<2x32xf32>
    %246 = arith.divf %244, %245 : vector<2x32xf32>
    %247 = vector.extract_strided_slice %234 {offsets = [0, 64], sizes = [2, 32], strides = [1, 1]} : vector<2x128xf32> to vector<2x32xf32>
    %248 = math.tanh %247 : vector<2x32xf32>
    %249 = vector.extract_strided_slice %234 {offsets = [0, 96], sizes = [2, 32], strides = [1, 1]} : vector<2x128xf32> to vector<2x32xf32>
    %250 = arith.negf %249 : vector<2x32xf32>
    %251 = math.exp %250 : vector<2x32xf32>
    %cst_68 = arith.constant 1.000000e+00 : f32
    %252 = vector.broadcast %cst_68 : f32 to vector<2x32xf32>
    %253 = arith.addf %252, %251 : vector<2x32xf32>
    %254 = arith.divf %252, %253 : vector<2x32xf32>
    %255 = arith.mulf %246, %221 : vector<2x32xf32>
    %256 = arith.mulf %240, %248 : vector<2x32xf32>
    %257 = arith.addf %255, %256 : vector<2x32xf32>
    %258 = math.tanh %257 : vector<2x32xf32>
    %259 = arith.mulf %254, %258 : vector<2x32xf32>
    %260 = math.tanh %259 : vector<2x32xf32>
    %c0_69 = arith.constant 0 : index
    %261 = arith.index_cast %c6_i32 : i32 to index
    %c0_70 = arith.constant 0 : index
    %262 = vector.load %arg5[%c0_69, %261, %c0_70] : memref<2x8x32xf32, #tpu.memory_space<vmem>>, vector<2x1x32xf32>
    %263 = vector.shape_cast %262 : vector<2x1x32xf32> to vector<2x32xf32>
    %264 = vector.shape_cast %260 : vector<2x32xf32> to vector<2x1x32xf32>
    tpu.vector_store %arg5[%c0_69, %261, %c0_70], %264 {strides = array<i32>} : memref<2x8x32xf32, #tpu.memory_space<vmem>>, vector<2x1x32xf32>,
    %c7_i32 = arith.constant 7 : i32
    %cst_71 = arith.constant dense<0.000000e+00> : vector<2x128xf32>
    %265 = tpu.matmul %259, %10, %cst_71 {dimension_numbers = #tpu.dot_dimension_numbers<[1], [0], [0], [1], [0, 0, 1, 1], [], []>} : vector<2x32xf32>, vector<32x128xf32>, vector<2x128xf32> -> vector<2x128xf32>
    %c2_i32_72 = arith.constant 2 : i32
    %266 = arith.muli %c7_i32, %c2_i32_72 : i32
    %267 = tpu.assume_multiple %266, 2 : i32
    %268 = arith.index_cast %267 : i32 to index
    %c0_73 = arith.constant 0 : index
    %269 = vector.load %arg6[%268, %c0_73] : memref<16x128xf32, #tpu.memory_space<vmem>>, vector<2x128xf32>
    %270 = arith.addf %269, %265 : vector<2x128xf32>
    %271 = vector.extract_strided_slice %270 {offsets = [0, 0], sizes = [2, 32], strides = [1, 1]} : vector<2x128xf32> to vector<2x32xf32>
    %272 = arith.negf %271 : vector<2x32xf32>
    %273 = math.exp %272 : vector<2x32xf32>
    %cst_74 = arith.constant 1.000000e+00 : f32
    %274 = vector.broadcast %cst_74 : f32 to vector<2x32xf32>
    %275 = arith.addf %274, %273 : vector<2x32xf32>
    %276 = arith.divf %274, %275 : vector<2x32xf32>
    %277 = vector.extract_strided_slice %270 {offsets = [0, 32], sizes = [2, 32], strides = [1, 1]} : vector<2x128xf32> to vector<2x32xf32>
    %278 = arith.negf %277 : vector<2x32xf32>
    %279 = math.exp %278 : vector<2x32xf32>
    %cst_75 = arith.constant 1.000000e+00 : f32
    %280 = vector.broadcast %cst_75 : f32 to vector<2x32xf32>
    %281 = arith.addf %280, %279 : vector<2x32xf32>
    %282 = arith.divf %280, %281 : vector<2x32xf32>
    %283 = vector.extract_strided_slice %270 {offsets = [0, 64], sizes = [2, 32], strides = [1, 1]} : vector<2x128xf32> to vector<2x32xf32>
    %284 = math.tanh %283 : vector<2x32xf32>
    %285 = vector.extract_strided_slice %270 {offsets = [0, 96], sizes = [2, 32], strides = [1, 1]} : vector<2x128xf32> to vector<2x32xf32>
    %286 = arith.negf %285 : vector<2x32xf32>
    %287 = math.exp %286 : vector<2x32xf32>
    %cst_76 = arith.constant 1.000000e+00 : f32
    %288 = vector.broadcast %cst_76 : f32 to vector<2x32xf32>
    %289 = arith.addf %288, %287 : vector<2x32xf32>
    %290 = arith.divf %288, %289 : vector<2x32xf32>
    %291 = arith.mulf %282, %257 : vector<2x32xf32>
    %292 = arith.mulf %276, %284 : vector<2x32xf32>
    %293 = arith.addf %291, %292 : vector<2x32xf32>
    %294 = math.tanh %293 : vector<2x32xf32>
    %295 = arith.mulf %290, %294 : vector<2x32xf32>
    %296 = math.tanh %295 : vector<2x32xf32>
    %c0_77 = arith.constant 0 : index
    %297 = arith.index_cast %c7_i32 : i32 to index
    %c0_78 = arith.constant 0 : index
    %298 = vector.load %arg5[%c0_77, %297, %c0_78] : memref<2x8x32xf32, #tpu.memory_space<vmem>>, vector<2x1x32xf32>
    %299 = vector.shape_cast %298 : vector<2x1x32xf32> to vector<2x32xf32>
    %300 = vector.shape_cast %296 : vector<2x32xf32> to vector<2x1x32xf32>
    tpu.vector_store %arg5[%c0_77, %297, %c0_78], %300 {strides = array<i32>} : memref<2x8x32xf32, #tpu.memory_space<vmem>>, vector<2x1x32xf32>,
    %c8_i32 = arith.constant 8 : i32
    %c0_79 = arith.constant 0 : index
    %c0_80 = arith.constant 0 : index
    %301 = vector.load %arg7[%c0_79, %c0_80] : memref<2x32xf32, #tpu.memory_space<vmem>>, vector<2x32xf32>
    tpu.vector_store %arg7[%c0_79, %c0_80], %295 {strides = array<i32>} : memref<2x32xf32, #tpu.memory_space<vmem>>, vector<2x32xf32>,
    %c0_81 = arith.constant 0 : index
    %c0_82 = arith.constant 0 : index
    %302 = vector.load %arg8[%c0_81, %c0_82] : memref<2x32xf32, #tpu.memory_space<vmem>>, vector<2x32xf32>
    tpu.vector_store %arg8[%c0_81, %c0_82], %293 {strides = array<i32>} : memref<2x32xf32, #tpu.memory_space<vmem>>, vector<2x32xf32>,
    return
  }
  func.func @transform_0(%arg0: i32) -> (i32, i32) {
    %c0_i32 = arith.constant 0 : i32
    %c0_i32_0 = arith.constant 0 : i32
    return %arg0, %c0_i32 : i32, i32
  }
  func.func @transform_1(%arg0: i32) -> (i32, i32) {
    %c0_i32 = arith.constant 0 : i32
    %c0_i32_0 = arith.constant 0 : i32
    %c0_i32_1 = arith.constant 0 : i32
    return %c0_i32, %c0_i32_0 : i32, i32
  }
  func.func @transform_2(%arg0: i32) -> (i32, i32) {
    %c0_i32 = arith.constant 0 : i32
    %c0_i32_0 = arith.constant 0 : i32
    %c0_i32_1 = arith.constant 0 : i32
    return %c0_i32, %c0_i32_0 : i32, i32
  }
  func.func @transform_3(%arg0: i32) -> (i32, i32) {
    %c0_i32 = arith.constant 0 : i32
    %c0_i32_0 = arith.constant 0 : i32
    %c0_i32_1 = arith.constant 0 : i32
    return %c0_i32, %c0_i32_0 : i32, i32
  }
  func.func @transform_4(%arg0: i32) -> (i32, i32, i32) {
    %c0_i32 = arith.constant 0 : i32
    %c0_i32_0 = arith.constant 0 : i32
    %c0_i32_1 = arith.constant 0 : i32
    return %c0_i32, %arg0, %c0_i32_0 : i32, i32, i32
  }
}

</mosaic_0001>

<bundles_post_ra>
// kernel: lstm_layer.1
= control target key start
LH: loop header
LB: loop body
LE: loop exit
PB: predicated region body
PF: predicated region fallthrough
CT: control target
= control target key end

     0   :  { %9 = vsyncpa [#allocation6], 0  ;;  %s1083_s0 = inlined_call_operand.vmem [shape: f32[16,4], index: 0, kind: input, shape index: {}]   ;;  %s1084_s1 = inlined_call_operand.vmem [shape: f32[4,128], index: 1, kind: input, shape index: {}]   ;;  %s1085_s2 = inlined_call_operand.hbm [shape: f32[32,128], index: 2, kind: input, shape index: {}]   ;;  %s1086_s3 = inlined_call_operand.vmem [shape: f32[1,128], index: 3, kind: input, shape index: {}]   ;;  %s1087_s4 = inlined_call_operand.hbm [shape: f32[2,8,32], index: 4, kind: output, shape index: {}]  }
   0x1   :  { %10 = vsyncpa [#allocation7], 0  ;;  %s19_s17 = sshll.u32 %s1085_s2, 4  ;;  %s907_s18 = smov [#allocation5]   ;;  %s20_s17 = int_to_ptr.hbm [resolvable:$true] %s19_s17 }
   0x2   :  { %s21_s19 = sshll.u32 %s907_s18, 4  ;;  %s908_s20 = smov 128   ;;  %s22_s19 = int_to_ptr.vmem [resolvable:$true] %s21_s19 }
   0x3   :  { %s909_s21 = smov 8  }
   0x4   :  { %27 = dma.hbm_to_vmem [thread:$0]  %s20_s17, 512, %s22_s19, [#allocation6], %s908_s20, %s908_s20, %s909_s21  }
   0x5   :  { %903 = dma.done.wait [#allocation6], 512  }
   0x6   :  { %904 = vsyncadd [#allocation6], 4294966784  ;;  %vm38_vm0 = vcmask 254976   ;;  %v910_v0 = vmov 0.0   ;;  %vm55_vm1 = vcmask 1043456   ;;  %vm48_vm2 = vcmask 31744  }
   0x7   :  { %39 = vst.msk [vmem:[#allocation3] sm:$0x3] %vm38_vm0, %v910_v0  ;;  %v43_v1 = vld [vmem:[%s1084_s1] sm:$0xf]  ;;  %v87_v3 = vld [vmem:[#allocation5 + $0x18] sm:$0xff]  ;;  %v86_v4 = vld [vmem:[#allocation5 + $0x10] sm:$0xff] }
   0x8   :  { %40 = vst.msk [vmem:[#allocation4] sm:$0x3] %vm38_vm0, %v910_v0  ;;  %v41_v2 = vld [vmem:[%s1083_s0] sm:$0xff]  ;;  %747 = vmatpush.msk.msra.mxu0 %vm55_vm1, %v43_v1  ;;  %106 = vmatpush.msra.mxu1 %v87_v3  ;;  %v84_v6 = vld [vmem:[#allocation5] sm:$0xff]  ;;  %vm90_vm3 = vcmask 261120   ;;  %s911_s26 = smov 64  }
   0x9   :  { %748 = vmatmul.msk.f32.vlgmr.msra.gmra.mxu0 %vm48_vm2, %v41_v2  ;;  %v85_v5 = vld [vmem:[#allocation5 + $0x8] sm:$0xff]  ;;  %188 = vmatpush.msra.mxu2 %v87_v3  ;;  %s912_s27 = smov 32   ;;  %s914_s29 = smov [#allocation8]  }
   0xa   :  { %107 = vmatpush.msra.mxu1 %v86_v4  ;;  %266 = vmatpush.msra.mxu3 %v87_v3  ;;  %v959_v8 = vld [vmem:[%s1086_s3] ss:$0 sm:$0xff]  ;;  %s732_s30 = sshll.u32 %s914_s29, 4  ;;  %s734_s7 = sshll.u32 %s1087_s4, 4  ;;  %s733_s30 = int_to_ptr.vmem [resolvable:$true] %s732_s30  ;;  %s735_s7 = int_to_ptr.hbm [resolvable:$true] %s734_s7 }
   0xb   :  { %189 = vmatpush.msra.mxu2 %v86_v4  ;;  %578 = vmatpush.msrb.mxu0 %v87_v3 }
   0xc   :  { %108 = vmatpush.msra.mxu1 %v85_v5  ;;  %267 = vmatpush.msra.mxu3 %v86_v4 }
   0xd   :  { %190 = vmatpush.msra.mxu2 %v85_v5  ;;  %579 = vmatpush.msrb.mxu0 %v86_v4 }
   0xe   :  { %v88_v7 = vld [vmem:[#allocation3] sm:$0x3]  ;;  %109 = vmatpush.msra.mxu1 %v84_v6  ;;  %268 = vmatpush.msra.mxu3 %v85_v5 }
   0xf   :  { %750 = vmatmul.msk.f32.vlgmr.msra.gmra.mxu1 %vm90_vm3, %v88_v7  ;;  %191 = vmatpush.msra.mxu2 %v84_v6  ;;  %v89_v15 = vld [vmem:[#allocation4] sm:$0x3] }
  0x10   :  { %269 = vmatpush.msra.mxu3 %v84_v6  ;;  %344 = vmatpush.msrb.mxu1 %v87_v3 }
  0x11   :  { %422 = vmatpush.msrb.mxu2 %v87_v3  ;;  %580 = vmatpush.msrb.mxu0 %v85_v5 }
  0x12   :  { %500 = vmatpush.msrb.mxu3 %v87_v3  ;;  %345 = vmatpush.msrb.mxu1 %v86_v4 }
  0x13   :  { %423 = vmatpush.msrb.mxu2 %v86_v4  ;;  %581 = vmatpush.msrb.mxu0 %v84_v6 }
  0x14   :  { %501 = vmatpush.msrb.mxu3 %v86_v4  ;;  %346 = vmatpush.msrb.mxu1 %v85_v5 }
  0x15   :  { %424 = vmatpush.msrb.mxu2 %v85_v5 }
  0x16   :  { %502 = vmatpush.msrb.mxu3 %v85_v5  ;;  %347 = vmatpush.msrb.mxu1 %v84_v6 }
  0x17   :  { %425 = vmatpush.msrb.mxu2 %v84_v6 }
  0x18   :  { %503 = vmatpush.msrb.mxu3 %v84_v6  ;;  %656 = vmatpush.msra.mxu1 %v87_v3 }
  0x1a   :  { %657 = vmatpush.msra.mxu1 %v86_v4 }
  0x1c   :  { %658 = vmatpush.msra.mxu1 %v85_v5 }
  0x1e   :  { %659 = vmatpush.msra.mxu1 %v84_v6 }
  0x86   :  { %v76_v9 = vpop.f32.mrf.mxu0 }
  0x87   :  { %v77_v10 = vadd.f32 %v959_v8, %v76_v9 }
  0x89   :  { %82 = vst [vmem:[#allocation2] sm:$0xff] %v77_v10 }
  0x8c   :  { %v111_v11 = vpop.f32.mrf.mxu1 }
  0x90   :  { %v114_v12 = vld [vmem:[#allocation2] sm:$0x3]  ;;  %v197_v40 = vld [vmem:[#allocation2 + $0x2] sm:$0x3]  ;;  %v275_v2 = vld [vmem:[#allocation2 + $0x4] sm:$0x3] }
  0x91   :  { %v115_v13 = vadd.f32 %v114_v12, %v111_v11 }
  0x93   :  { %775 = vtanh.f32 %v115_v13  ;;  %v751_v16 = vmul.f32 -1.442695, %v115_v13 }
  0x95   :  { %777 = vpow2.f32 %v751_v16 }
  0x99   :  { %v776_v14 = vpop.eup %775 }
  0x9a   :  { %142 = vrot.lane.b32.xlu0 %v776_v14, %s911_s26 }
  0x9b   :  { %v778_v17 = vpop.eup %777 }
  0x9c   :  { %v119_v18 = vadd.f32 1.0, %v778_v17 }
  0x9e   :  { %779 = vrcp.f32 %v119_v18  ;;  %v131_v24 = vand.u32 2147483648, %v119_v18  ;;  %vm125_vm5 = vweird.f32 %v119_v18  ;;  %v129_v25 = vand.u32 2147483647, %v119_v18 }
  0xa0   :  { %v132_v27 = vor.u32 1.1754944e-38, %v131_v24  ;;  %vm130_vm7 = vcmp.eq.f32.partialorder %v129_v25, 8.507059e+37 }
  0xa2   :  { %137 = vrot.lane.b32.xlu0 %v89_v15, %s912_s27 }
  0xa4   :  { %v780_v19 = vpop.eup %779 }
  0xa5   :  { %v121_v20 = vmul.f32 %v780_v19, %v119_v18  ;;  %vm126_vm4 = vweird.f32 %v780_v19 }
  0xa6   :  { %vm127_vm6 = vmor %vm125_vm5, %vm126_vm4 }
  0xa7   :  { %v122_v21 = vsub.f32 1.0, %v121_v20 }
  0xa9   :  { %v123_v22 = vmul.f32 %v780_v19, %v122_v21 }
  0xab   :  { %v124_v23 = vadd.f32 %v780_v19, %v123_v22 }
  0xad   :  { %v128_v26 = vsel %vm127_vm6, %v780_v19, %v124_v23 }
  0xae   :  { %v133_v29 = vsel %vm130_vm7, %v132_v27, %v128_v26 }
 0x10c   :  { %v143_v28 = vpop.permute.xlu0 %142 }
 0x10d   :  { %v145_v30 = vmul.f32 %v143_v28, %v133_v29 }
 0x10f   :  { %147 = vrot.lane.b32.xlu1 %v145_v30, %s912_s27 }
 0x114   :  { %v138_v31 = vpop.permute.xlu0 %137 }
 0x115   :  { %v140_v32 = vmul.f32 %v138_v31, %v133_v29 }
 0x181   :  { %v148_v33 = vpop.permute.xlu1 %147 }
 0x182   :  { %v150_v34 = vadd.f32 %v148_v33, %v140_v32 }
 0x184   :  { %781 = vtanh.f32 %v150_v34 }
 0x18a   :  { %v782_v35 = vpop.eup %781 }
 0x18b   :  { %153 = vrot.lane.b32.xlu1 %v782_v35, %s911_s26 }
 0x1fd   :  { %v154_v36 = vpop.permute.xlu1 %153 }
 0x1fe   :  { %v966_v37 = vmul.f32 %v154_v36, %v133_v29  ;;  %v353_v29 = vld [vmem:[#allocation2 + $0x6] sm:$0x3] }
 0x200   :  { %172 = vrot.lane.b32.xlu2 %v966_v37, %s912_s27 }
 0x25a   :  { %v173_v38 = vpop.permute.xlu2 %172 }
 0x25b   :  { %752 = vmatmul.msk.f32.vlgmr.msra.gmra.mxu2 %vm90_vm3, %v173_v38 }
 0x2de   :  { %v193_v39 = vpop.f32.mrf.mxu2 }
 0x2df   :  { %v198_v41 = vadd.f32 %v197_v40, %v193_v39 }
 0x2e1   :  { %783 = vtanh.f32 %v198_v41  ;;  %v753_v43 = vmul.f32 -1.442695, %v198_v41 }
 0x2e3   :  { %785 = vpow2.f32 %v753_v43 }
 0x2e7   :  { %v784_v42 = vpop.eup %783 }
 0x2e8   :  { %221 = vrot.lane.b32.xlu2 %v784_v42, %s911_s26 }
 0x2e9   :  { %v786_v44 = vpop.eup %785 }
 0x2ea   :  { %v202_v45 = vadd.f32 1.0, %v786_v44 }
 0x2ec   :  { %787 = vrcp.f32 %v202_v45  ;;  %v214_v51 = vand.u32 2147483648, %v202_v45  ;;  %vm208_vm9 = vweird.f32 %v202_v45  ;;  %v212_v52 = vand.u32 2147483647, %v202_v45 }
 0x2ee   :  { %v215_v54 = vor.u32 1.1754944e-38, %v214_v51  ;;  %vm213_vm11 = vcmp.eq.f32.partialorder %v212_v52, 8.507059e+37  ;;  %v42_v52 = vld [vmem:[%s1083_s0 + $0x8] sm:$0xff]  ;;  %s913_s0 = smov 96  }
 0x2ef   :  { %749 = vmatmul.msk.f32.gmra.mxu0 %vm48_vm2, %v42_v52 }
 0x2f2   :  { %v788_v46 = vpop.eup %787 }
 0x2f3   :  { %v204_v47 = vmul.f32 %v788_v46, %v202_v45  ;;  %vm209_vm8 = vweird.f32 %v788_v46 }
 0x2f4   :  { %vm210_vm10 = vmor %vm208_vm9, %vm209_vm8 }
 0x2f5   :  { %v205_v48 = vsub.f32 1.0, %v204_v47 }
 0x2f7   :  { %v206_v49 = vmul.f32 %v788_v46, %v205_v48 }
 0x2f9   :  { %v207_v50 = vadd.f32 %v788_v46, %v206_v49 }
 0x2fb   :  { %v211_v53 = vsel %vm210_vm10, %v788_v46, %v207_v50 }
 0x2fc   :  { %v216_v56 = vsel %vm213_vm11, %v215_v54, %v211_v53 }
 0x2fd   :  { %v219_v58 = vmul.f32 %v216_v56, %v150_v34 }
 0x342   :  { %v222_v55 = vpop.permute.xlu2 %221 }
 0x343   :  { %v224_v57 = vmul.f32 %v222_v55, %v216_v56 }
 0x345   :  { %226 = vrot.lane.b32.xlu0 %v224_v57, %s912_s27 }
 0x36c   :  { %v79_v55 = vpop.f32.mrf.mxu0 }
 0x3b7   :  { %v227_v59 = vpop.permute.xlu0 %226 }
 0x3b8   :  { %v229_v60 = vadd.f32 %v227_v59, %v219_v58 }
 0x3ba   :  { %789 = vtanh.f32 %v229_v60 }
 0x3c0   :  { %v790_v61 = vpop.eup %789 }
 0x3c1   :  { %232 = vrot.lane.b32.xlu1 %v790_v61, %s911_s26 }
 0x433   :  { %v233_v62 = vpop.permute.xlu1 %232 }
 0x434   :  { %v974_v63 = vmul.f32 %v233_v62, %v216_v56  ;;  %v80_v56 = vadd.f32 %v959_v8, %v79_v55 }
 0x436   :  { %250 = vrot.lane.b32.xlu2 %v974_v63, %s912_s27  ;;  %83 = vst [vmem:[#allocation2 + $0x8] sm:$0xff] %v80_v56 }
 0x43d   :  { %v431_v58 = vld [vmem:[#allocation2 + $0x8] sm:$0x3] }
 0x490   :  { %v251_v0 = vpop.permute.xlu2 %250 }
 0x491   :  { %754 = vmatmul.msk.f32.vlgmr.msra.gmra.mxu3 %vm90_vm3, %v251_v0 }
 0x514   :  { %v271_v1 = vpop.f32.mrf.mxu3 }
 0x515   :  { %v276_v3 = vadd.f32 %v275_v2, %v271_v1 }
 0x517   :  { %791 = vtanh.f32 %v276_v3  ;;  %v755_v5 = vmul.f32 -1.442695, %v276_v3 }
 0x519   :  { %793 = vpow2.f32 %v755_v5 }
 0x51d   :  { %v792_v4 = vpop.eup %791 }
 0x51e   :  { %299 = vrot.lane.b32.xlu0 %v792_v4, %s911_s26 }
 0x51f   :  { %v794_v6 = vpop.eup %793 }
 0x520   :  { %v280_v7 = vadd.f32 1.0, %v794_v6 }
 0x522   :  { %795 = vrcp.f32 %v280_v7  ;;  %v292_v14 = vand.u32 2147483648, %v280_v7  ;;  %vm286_vm13 = vweird.f32 %v280_v7  ;;  %v290_v15 = vand.u32 2147483647, %v280_v7 }
 0x524   :  { %v293_v17 = vor.u32 1.1754944e-38, %v292_v14  ;;  %vm291_vm15 = vcmp.eq.f32.partialorder %v290_v15, 8.507059e+37 }
 0x528   :  { %v796_v9 = vpop.eup %795 }
 0x529   :  { %v282_v10 = vmul.f32 %v796_v9, %v280_v7  ;;  %vm287_vm12 = vweird.f32 %v796_v9 }
 0x52a   :  { %vm288_vm14 = vmor %vm286_vm13, %vm287_vm12 }
 0x52b   :  { %v283_v11 = vsub.f32 1.0, %v282_v10 }
 0x52d   :  { %v284_v12 = vmul.f32 %v796_v9, %v283_v11 }
 0x52f   :  { %v285_v13 = vadd.f32 %v796_v9, %v284_v12 }
 0x531   :  { %v289_v16 = vsel %vm288_vm14, %v796_v9, %v285_v13 }
 0x532   :  { %v294_v19 = vsel %vm291_vm15, %v293_v17, %v289_v16 }
 0x533   :  { %v297_v21 = vmul.f32 %v294_v19, %v229_v60 }
 0x590   :  { %v300_v18 = vpop.permute.xlu0 %299 }
 0x591   :  { %v302_v20 = vmul.f32 %v300_v18, %v294_v19 }
 0x593   :  { %304 = vrot.lane.b32.xlu1 %v302_v20, %s912_s27 }
 0x605   :  { %v305_v22 = vpop.permute.xlu1 %304 }
 0x606   :  { %v307_v23 = vadd.f32 %v305_v22, %v297_v21  ;;  %v509_v22 = vld [vmem:[#allocation2 + $0xa] sm:$0x3] }
 0x608   :  { %797 = vtanh.f32 %v307_v23 }
 0x60e   :  { %v798_v24 = vpop.eup %797 }
 0x60f   :  { %310 = vrot.lane.b32.xlu2 %v798_v24, %s911_s26 }
 0x669   :  { %v311_v25 = vpop.permute.xlu2 %310 }
 0x66a   :  { %v982_v26 = vmul.f32 %v311_v25, %v294_v19 }
 0x66c   :  { %328 = vrot.lane.b32.xlu0 %v982_v26, %s912_s27 }
 0x6de   :  { %v329_v27 = vpop.permute.xlu0 %328 }
 0x6df   :  { %756 = vmatmul.msk.f32.vlgmr.msrb.gmra.mxu1 %vm90_vm3, %v329_v27 }
 0x75c   :  { %v349_v28 = vpop.f32.mrf.mxu1 }
 0x75d   :  { %v354_v30 = vadd.f32 %v353_v29, %v349_v28 }
 0x75f   :  { %799 = vtanh.f32 %v354_v30  ;;  %v757_v32 = vmul.f32 -1.442695, %v354_v30 }
 0x761   :  { %801 = vpow2.f32 %v757_v32 }
 0x765   :  { %v800_v31 = vpop.eup %799 }
 0x766   :  { %377 = vrot.lane.b32.xlu1 %v800_v31, %s911_s26 }
 0x767   :  { %v802_v33 = vpop.eup %801 }
 0x768   :  { %v358_v34 = vadd.f32 1.0, %v802_v33 }
 0x76a   :  { %803 = vrcp.f32 %v358_v34  ;;  %v370_v41 = vand.u32 2147483648, %v358_v34  ;;  %vm364_vm4 = vweird.f32 %v358_v34  ;;  %v368_v42 = vand.u32 2147483647, %v358_v34 }
 0x76c   :  { %v371_v44 = vor.u32 1.1754944e-38, %v370_v41  ;;  %vm369_vm6 = vcmp.eq.f32.partialorder %v368_v42, 8.507059e+37 }
 0x770   :  { %v804_v35 = vpop.eup %803 }
 0x771   :  { %v360_v36 = vmul.f32 %v804_v35, %v358_v34  ;;  %vm365_vm1 = vweird.f32 %v804_v35 }
 0x772   :  { %vm366_vm5 = vmor %vm364_vm4, %vm365_vm1 }
 0x773   :  { %v361_v38 = vsub.f32 1.0, %v360_v36 }
 0x775   :  { %v362_v39 = vmul.f32 %v804_v35, %v361_v38 }
 0x777   :  { %v363_v40 = vadd.f32 %v804_v35, %v362_v39 }
 0x779   :  { %v367_v43 = vsel %vm366_vm5, %v804_v35, %v363_v40 }
 0x77a   :  { %v372_v46 = vsel %vm369_vm6, %v371_v44, %v367_v43 }
 0x77b   :  { %v375_v48 = vmul.f32 %v372_v46, %v307_v23 }
 0x7d8   :  { %v378_v45 = vpop.permute.xlu1 %377 }
 0x7d9   :  { %v380_v47 = vmul.f32 %v378_v45, %v372_v46 }
 0x7db   :  { %382 = vrot.lane.b32.xlu2 %v380_v47, %s912_s27 }
 0x835   :  { %v383_v49 = vpop.permute.xlu2 %382 }
 0x836   :  { %v385_v50 = vadd.f32 %v383_v49, %v375_v48 }
 0x838   :  { %805 = vtanh.f32 %v385_v50 }
 0x83e   :  { %v806_v51 = vpop.eup %805 }
 0x83f   :  { %388 = vrot.lane.b32.xlu0 %v806_v51, %s911_s26 }
 0x8b1   :  { %v389_v53 = vpop.permute.xlu0 %388 }
 0x8b2   :  { %v994_v54 = vmul.f32 %v389_v53, %v372_v46 }
 0x8b4   :  { %406 = vrot.lane.b32.xlu1 %v994_v54, %s912_s27 }
 0x926   :  { %v407_v57 = vpop.permute.xlu1 %406 }
 0x927   :  { %758 = vmatmul.msk.f32.vlgmr.msrb.gmra.mxu2 %vm90_vm3, %v407_v57 }
 0x9aa   :  { %v427_v59 = vpop.f32.mrf.mxu2 }
 0x9ab   :  { %v432_v60 = vadd.f32 %v431_v58, %v427_v59 }
 0x9ad   :  { %807 = vtanh.f32 %v432_v60  ;;  %v759_v62 = vmul.f32 -1.442695, %v432_v60 }
 0x9af   :  { %809 = vpow2.f32 %v759_v62 }
 0x9b3   :  { %v808_v61 = vpop.eup %807 }
 0x9b4   :  { %455 = vrot.lane.b32.xlu2 %v808_v61, %s911_s26 }
 0x9b5   :  { %v810_v0 = vpop.eup %809 }
 0x9b6   :  { %v436_v1 = vadd.f32 1.0, %v810_v0 }
 0x9b8   :  { %811 = vrcp.f32 %v436_v1  ;;  %v448_v6 = vand.u32 2147483648, %v436_v1  ;;  %vm442_vm7 = vweird.f32 %v436_v1  ;;  %v446_v7 = vand.u32 2147483647, %v436_v1 }
 0x9ba   :  { %v449_v10 = vor.u32 1.1754944e-38, %v448_v6  ;;  %vm447_vm9 = vcmp.eq.f32.partialorder %v446_v7, 8.507059e+37 }
 0x9be   :  { %v812_v2 = vpop.eup %811 }
 0x9bf   :  { %v438_v3 = vmul.f32 %v812_v2, %v436_v1  ;;  %vm443_vm2 = vweird.f32 %v812_v2 }
 0x9c0   :  { %vm444_vm8 = vmor %vm442_vm7, %vm443_vm2  ;;  %vm168_vm7 = vcmask 253952  }
 0x9c1   :  { %v439_v4 = vsub.f32 1.0, %v438_v3 }
 0x9c3   :  { %v440_v8 = vmul.f32 %v812_v2, %v439_v4 }
 0x9c5   :  { %v441_v5 = vadd.f32 %v812_v2, %v440_v8 }
 0x9c7   :  { %v445_v9 = vsel %vm444_vm8, %v812_v2, %v441_v5 }
 0x9c8   :  { %v450_v12 = vsel %vm447_vm9, %v449_v10, %v445_v9 }
 0x9c9   :  { %v453_v14 = vmul.f32 %v450_v12, %v385_v50  ;;  %v587_v50 = vld [vmem:[#allocation2 + $0xc] sm:$0x3] }
 0xa0e   :  { %v456_v11 = vpop.permute.xlu2 %455 }
 0xa0f   :  { %v458_v13 = vmul.f32 %v456_v11, %v450_v12 }
 0xa11   :  { %460 = vrot.lane.b32.xlu0 %v458_v13, %s912_s27 }
 0xa83   :  { %v461_v15 = vpop.permute.xlu0 %460 }
 0xa84   :  { %v463_v16 = vadd.f32 %v461_v15, %v453_v14  ;;  %v665_v14 = vld [vmem:[#allocation2 + $0xe] sm:$0x3] }
 0xa86   :  { %813 = vtanh.f32 %v463_v16 }
 0xa8c   :  { %v814_v17 = vpop.eup %813 }
 0xa8d   :  { %466 = vrot.lane.b32.xlu1 %v814_v17, %s911_s26 }
 0xaff   :  { %v467_v18 = vpop.permute.xlu1 %466 }
 0xb00   :  { %v1003_v19 = vmul.f32 %v467_v18, %v450_v12 }
 0xb02   :  { %484 = vrot.lane.b32.xlu2 %v1003_v19, %s912_s27 }
 0xb5c   :  { %v485_v20 = vpop.permute.xlu2 %484 }
 0xb5d   :  { %760 = vmatmul.msk.f32.vlgmr.msrb.gmra.mxu3 %vm90_vm3, %v485_v20 }
 0xbe0   :  { %v505_v21 = vpop.f32.mrf.mxu3 }
 0xbe1   :  { %v510_v23 = vadd.f32 %v509_v22, %v505_v21 }
 0xbe3   :  { %815 = vtanh.f32 %v510_v23  ;;  %v761_v25 = vmul.f32 -1.442695, %v510_v23 }
 0xbe5   :  { %817 = vpow2.f32 %v761_v25 }
 0xbe9   :  { %v816_v24 = vpop.eup %815 }
 0xbea   :  { %533 = vrot.lane.b32.xlu0 %v816_v24, %s911_s26 }
 0xbeb   :  { %v818_v27 = vpop.eup %817 }
 0xbec   :  { %v514_v28 = vadd.f32 1.0, %v818_v27 }
 0xbee   :  { %819 = vrcp.f32 %v514_v28  ;;  %v526_v34 = vand.u32 2147483648, %v514_v28  ;;  %vm520_vm11 = vweird.f32 %v514_v28  ;;  %v524_v35 = vand.u32 2147483647, %v514_v28 }
 0xbf0   :  { %v527_v38 = vor.u32 1.1754944e-38, %v526_v34  ;;  %vm525_vm13 = vcmp.eq.f32.partialorder %v524_v35, 8.507059e+37 }
 0xbf4   :  { %v820_v29 = vpop.eup %819 }
 0xbf5   :  { %v516_v30 = vmul.f32 %v820_v29, %v514_v28  ;;  %vm521_vm10 = vweird.f32 %v820_v29 }
 0xbf6   :  { %vm522_vm12 = vmor %vm520_vm11, %vm521_vm10 }
 0xbf7   :  { %v517_v31 = vsub.f32 1.0, %v516_v30 }
 0xbf9   :  { %v518_v32 = vmul.f32 %v820_v29, %v517_v31 }
 0xbfb   :  { %v519_v33 = vadd.f32 %v820_v29, %v518_v32 }
 0xbfd   :  { %v523_v36 = vsel %vm522_vm12, %v820_v29, %v519_v33 }
 0xbfe   :  { %v528_v40 = vsel %vm525_vm13, %v527_v38, %v523_v36 }
 0xbff   :  { %v531_v42 = vmul.f32 %v528_v40, %v463_v16 }
 0xc5c   :  { %v534_v39 = vpop.permute.xlu0 %533 }
 0xc5d   :  { %v536_v41 = vmul.f32 %v534_v39, %v528_v40 }
 0xc5f   :  { %538 = vrot.lane.b32.xlu1 %v536_v41, %s912_s27 }
 0xcd1   :  { %v539_v43 = vpop.permute.xlu1 %538 }
 0xcd2   :  { %v541_v44 = vadd.f32 %v539_v43, %v531_v42 }
 0xcd4   :  { %821 = vtanh.f32 %v541_v44 }
 0xcda   :  { %v822_v45 = vpop.eup %821 }
 0xcdb   :  { %544 = vrot.lane.b32.xlu2 %v822_v45, %s911_s26 }
 0xd35   :  { %v545_v46 = vpop.permute.xlu2 %544 }
 0xd36   :  { %v1011_v47 = vmul.f32 %v545_v46, %v528_v40 }
 0xd38   :  { %562 = vrot.lane.b32.xlu0 %v1011_v47, %s912_s27 }
 0xdaa   :  { %v563_v48 = vpop.permute.xlu0 %562 }
 0xdab   :  { %762 = vmatmul.msk.f32.vlgmr.msrb.gmra.mxu0 %vm90_vm3, %v563_v48 }
 0xe28   :  { %v583_v49 = vpop.f32.mrf.mxu0 }
 0xe29   :  { %v588_v51 = vadd.f32 %v587_v50, %v583_v49 }
 0xe2b   :  { %823 = vtanh.f32 %v588_v51  ;;  %v763_v53 = vmul.f32 -1.442695, %v588_v51 }
 0xe2d   :  { %825 = vpow2.f32 %v763_v53 }
 0xe31   :  { %v824_v52 = vpop.eup %823 }
 0xe32   :  { %611 = vrot.lane.b32.xlu1 %v824_v52, %s911_s26 }
 0xe33   :  { %v826_v55 = vpop.eup %825 }
 0xe34   :  { %v592_v56 = vadd.f32 1.0, %v826_v55 }
 0xe36   :  { %827 = vrcp.f32 %v592_v56  ;;  %v604_v62 = vand.u32 2147483648, %v592_v56  ;;  %vm598_vm15 = vweird.f32 %v592_v56  ;;  %v602_v0 = vand.u32 2147483647, %v592_v56 }
 0xe38   :  { %v605_v2 = vor.u32 1.1754944e-38, %v604_v62  ;;  %vm603_vm4 = vcmp.eq.f32.partialorder %v602_v0, 8.507059e+37 }
 0xe3c   :  { %v828_v57 = vpop.eup %827 }
 0xe3d   :  { %v594_v58 = vmul.f32 %v828_v57, %v592_v56  ;;  %vm599_vm14 = vweird.f32 %v828_v57 }
 0xe3e   :  { %vm600_vm1 = vmor %vm598_vm15, %vm599_vm14 }
 0xe3f   :  { %v595_v59 = vsub.f32 1.0, %v594_v58 }
 0xe41   :  { %v596_v60 = vmul.f32 %v828_v57, %v595_v59 }
 0xe43   :  { %v597_v61 = vadd.f32 %v828_v57, %v596_v60 }
 0xe45   :  { %v601_v1 = vsel %vm600_vm1, %v828_v57, %v597_v61 }
 0xe46   :  { %v606_v4 = vsel %vm603_vm4, %v605_v2, %v601_v1 }
 0xe47   :  { %v609_v5 = vmul.f32 %v606_v4, %v541_v44 }
 0xea4   :  { %v612_v3 = vpop.permute.xlu1 %611 }
 0xea5   :  { %v614_v8 = vmul.f32 %v612_v3, %v606_v4 }
 0xea7   :  { %616 = vrot.lane.b32.xlu2 %v614_v8, %s912_s27 }
 0xf01   :  { %v617_v6 = vpop.permute.xlu2 %616 }
 0xf02   :  { %v1018_v7 = vadd.f32 %v617_v6, %v609_v5 }
 0xf04   :  { %829 = vtanh.f32 %v1018_v7 }
 0xf0a   :  { %v830_v9 = vpop.eup %829 }
 0xf0b   :  { %622 = vrot.lane.b32.xlu0 %v830_v9, %s911_s26 }
 0xf7d   :  { %v623_v10 = vpop.permute.xlu0 %622 }
 0xf7e   :  { %v625_v11 = vmul.f32 %v623_v10, %v606_v4 }
 0xf80   :  { %640 = vrot.lane.b32.xlu1 %v625_v11, %s912_s27 }
 0xff2   :  { %v641_v12 = vpop.permute.xlu1 %640 }
 0xff3   :  { %764 = vmatmul.msk.f32.vlgmr.msra.gmra.mxu1 %vm90_vm3, %v641_v12 }
0x1070   :  { %v661_v13 = vpop.f32.mrf.mxu1 }
0x1071   :  { %v666_v15 = vadd.f32 %v665_v14, %v661_v13 }
0x1073   :  { %831 = vtanh.f32 %v666_v15 }
0x1074   :  { %833 = vtanh.f32 %v966_v37 }
0x1075   :  { %835 = vtanh.f32 %v974_v63 }
0x1076   :  { %837 = vtanh.f32 %v994_v54  ;;  %v765_v54 = vmul.f32 -1.442695, %v666_v15 }
0x1077   :  { %839 = vtanh.f32 %v1003_v19 }
0x1078   :  { %841 = vtanh.f32 %v625_v11 }
0x1079   :  { %v832_v16 = vpop.eup %831  ;;  %843 = vpow2.f32 %v765_v54 }
0x107a   :  { %689 = vrot.lane.b32.xlu2 %v832_v16, %s911_s26  ;;  %v834_v17 = vpop.eup %833 }
0x107b   :  { %v160_v18 = vperm.slane %v834_v17, 0  ;;  %v1027_v20 = vpop.eup %835  ;;  %v159_v43 = vrot.slane %v834_v17, 1 }
0x107c   :  { %v238_v21 = vrot.slane %v1027_v20, 1  ;;  %v838_v37 = vpop.eup %837  ;;  %v239_v1 = vperm.slane %v1027_v20, 0 }
0x107d   :  { %v395_v23 = vperm.slane %v838_v37, 0  ;;  %v1034_v24 = vpop.eup %839  ;;  %v161_v45 = vperm.slane %v159_v43, 0  ;;  %v394_v50 = vrot.slane %v838_v37, 1 }
0x107e   :  { %v240_v22 = vperm.slane %v238_v21, 0  ;;  %v472_v63 = vrot.slane %v1034_v24, 1  ;;  %v842_v27 = vpop.eup %841  ;;  %v473_v5 = vperm.slane %v1034_v24, 0 }
0x107f   :  { %v629_v28 = vperm.slane %v842_v27, 0  ;;  %v844_v29 = vpop.eup %843  ;;  %v628_v56 = vrot.slane %v842_v27, 1 }
0x1080   :  { %v474_v25 = vperm.slane %v472_v63, 0  ;;  %v670_v19 = vadd.f32 1.0, %v844_v29 }
0x1081   :  { %v630_v58 = vperm.slane %v628_v56, 0 }
0x1082   :  { %162 = vrot.lane.b32.xlu2 %v160_v18, %s912_s27  ;;  %845 = vrcp.f32 %v670_v19  ;;  %v682_v35 = vand.u32 2147483648, %v670_v19  ;;  %vm676_vm5 = vweird.f32 %v670_v19  ;;  %v680_v36 = vand.u32 2147483647, %v670_v19 }
0x1083   :  { %847 = vtanh.f32 %v982_v26  ;;  %v396_v26 = vperm.slane %v394_v50, 0 }
0x1084   :  { %v683_v39 = vor.u32 1.1754944e-38, %v682_v35  ;;  %vm681_vm2 = vcmp.eq.f32.partialorder %v680_v36, 8.507059e+37  ;;  %849 = vtanh.f32 %v1011_v47 }
0x1088   :  { %v846_v30 = vpop.eup %845 }
0x1089   :  { %v672_v31 = vmul.f32 %v846_v30, %v670_v19  ;;  %vm677_vm3 = vweird.f32 %v846_v30  ;;  %v848_v46 = vpop.eup %847 }
0x108a   :  { %243 = vrot.lane.b32.xlu2 %v240_v22, %s912_s27  ;;  %vm678_vm6 = vmor %vm676_vm5, %vm677_vm3  ;;  %v317_v49 = vperm.slane %v848_v46, 0  ;;  %v850_v52 = vpop.eup %849  ;;  %v316_v2 = vrot.slane %v848_v46, 1 }
0x108b   :  { %v673_v32 = vsub.f32 1.0, %v672_v31  ;;  %v551_v55 = vperm.slane %v850_v52, 0  ;;  %v550_v6 = vrot.slane %v850_v52, 1 }
0x108c   :  { %v318_v4 = vperm.slane %v316_v2, 0 }
0x108d   :  { %v674_v33 = vmul.f32 %v846_v30, %v673_v32  ;;  %v552_v9 = vperm.slane %v550_v6, 0 }
0x108f   :  { %v675_v34 = vadd.f32 %v846_v30, %v674_v33 }
0x1091   :  { %v679_v38 = vsel %vm678_vm6, %v846_v30, %v675_v34 }
0x1092   :  { %397 = vrot.lane.b32.xlu2 %v395_v23, %s912_s27  ;;  %v684_v41 = vsel %vm681_vm2, %v683_v39, %v679_v38 }
0x1093   :  { %v687_v47 = vmul.f32 %v684_v41, %v1018_v7 }
0x109a   :  { %477 = vrot.lane.b32.xlu2 %v474_v25, %s912_s27 }
0x10a2   :  { %631 = vrot.lane.b32.xlu2 %v629_v28, %s912_s27 }
0x10d4   :  { %v690_v40 = vpop.permute.xlu2 %689 }
0x10d5   :  { %v692_v42 = vmul.f32 %v690_v40, %v684_v41 }
0x10d7   :  { %694 = vrot.lane.b32.xlu0 %v692_v42, %s912_s27 }
0x10dc   :  { %v163_v44 = vpop.permute.xlu2 %162 }
0x10dd   :  { %169 = vst.msk [vmem:[#allocation8] sm:$0x1] %vm168_vm7, %v163_v44 }
0x10df   :  { %164 = vrot.lane.b32.xlu0 %v161_v45, %s912_s27 }
0x10e4   :  { %v244_v48 = vpop.permute.xlu2 %243 }
0x10e5   :  { %248 = vst.msk [vmem:[#allocation8 + $0x9] sm:$0x1] %vm168_vm7, %v244_v48 }
0x10e7   :  { %319 = vrot.lane.b32.xlu0 %v317_v49, %s912_s27 }
0x10ec   :  { %v398_v51 = vpop.permute.xlu2 %397 }
0x10ed   :  { %403 = vst.msk [vmem:[#allocation8 + $0x3] sm:$0x1] %vm168_vm7, %v398_v51 }
0x10ef   :  { %399 = vrot.lane.b32.xlu0 %v396_v26, %s912_s27 }
0x10f4   :  { %v478_v53 = vpop.permute.xlu2 %477 }
0x10f5   :  { %482 = vst.msk [vmem:[#allocation8 + $0xc] sm:$0x1] %vm168_vm7, %v478_v53 }
0x10f7   :  { %553 = vrot.lane.b32.xlu0 %v551_v55, %s912_s27 }
0x10fc   :  { %v632_v57 = vpop.permute.xlu2 %631 }
0x10fd   :  { %637 = vst.msk [vmem:[#allocation8 + $0x6] sm:$0x1] %vm168_vm7, %v632_v57 }
0x10ff   :  { %633 = vrot.lane.b32.xlu0 %v630_v58, %s912_s27 }
0x1149   :  { %v695_v59 = vpop.permute.xlu0 %694 }
0x114a   :  { %v697_v60 = vadd.f32 %v695_v59, %v687_v47 }
0x114c   :  { %851 = vtanh.f32 %v697_v60 }
0x1151   :  { %v165_v61 = vpop.permute.xlu0 %164 }
0x1152   :  { %v852_v62 = vpop.eup %851  ;;  %170 = vst.msk [vmem:[#allocation8 + $0x8] sm:$0x1] %vm168_vm7, %v165_v61 }
0x1153   :  { %700 = vrot.lane.b32.xlu1 %v852_v62, %s911_s26 }
0x1159   :  { %v320_v0 = vpop.permute.xlu0 %319 }
0x115a   :  { %325 = vst.msk [vmem:[#allocation8 + $0x2] sm:$0x1] %vm168_vm7, %v320_v0 }
0x115b   :  { %241 = vrot.lane.b32.xlu1 %v239_v1, %s912_s27 }
0x1161   :  { %v400_v3 = vpop.permute.xlu0 %399 }
0x1162   :  { %404 = vst.msk [vmem:[#allocation8 + $0xb] sm:$0x1] %vm168_vm7, %v400_v3 }
0x1163   :  { %321 = vrot.lane.b32.xlu1 %v318_v4, %s912_s27 }
0x1169   :  { %v554_v8 = vpop.permute.xlu0 %553 }
0x116a   :  { %559 = vst.msk [vmem:[#allocation8 + $0x5] sm:$0x1] %vm168_vm7, %v554_v8 }
0x116b   :  { %475 = vrot.lane.b32.xlu1 %v473_v5, %s912_s27 }
0x1171   :  { %v634_v7 = vpop.permute.xlu0 %633 }
0x1172   :  { %638 = vst.msk [vmem:[#allocation8 + $0xe] sm:$0x1] %vm168_vm7, %v634_v7 }
0x1173   :  { %555 = vrot.lane.b32.xlu1 %v552_v9, %s912_s27 }
0x11c5   :  { %v701_v10 = vpop.permute.xlu1 %700 }
0x11c6   :  { %v703_v11 = vmul.f32 %v701_v10, %v684_v41 }
0x11c8   :  { %853 = vtanh.f32 %v703_v11  ;;  %718 = vrot.lane.b32.xlu0 %v703_v11, %s912_s27 }
0x11cd   :  { %v242_v12 = vpop.permute.xlu1 %241 }
0x11ce   :  { %v854_v13 = vpop.eup %853  ;;  %247 = vst.msk [vmem:[#allocation8 + $0x1] sm:$0x1] %vm168_vm7, %v242_v12 }
0x11cf   :  { %v707_v14 = vperm.slane %v854_v13, 0  ;;  %v706_v15 = vrot.slane %v854_v13, 1 }
0x11d1   :  { %709 = vrot.lane.b32.xlu1 %v707_v14, %s912_s27  ;;  %v708_v16 = vperm.slane %v706_v15, 0 }
0x11d3   :  { %711 = vrot.lane.b32.xlu2 %v708_v16, %s912_s27 }
0x11d5   :  { %v322_v17 = vpop.permute.xlu1 %321 }
0x11d6   :  { %326 = vst.msk [vmem:[#allocation8 + $0xa] sm:$0x1] %vm168_vm7, %v322_v17 }
0x11d9   :  { %724 = vrot.lane.b32.xlu1 %v697_v60, %s913_s0 }
0x11dd   :  { %v476_v18 = vpop.permute.xlu1 %475 }
0x11de   :  { %481 = vst.msk [vmem:[#allocation8 + $0x4] sm:$0x1] %vm168_vm7, %v476_v18 }
0x11e5   :  { %v556_v20 = vpop.permute.xlu1 %555 }
0x11e6   :  { %560 = vst.msk [vmem:[#allocation8 + $0xd] sm:$0x1] %vm168_vm7, %v556_v20 }
0x122d   :  { %v712_v21 = vpop.permute.xlu2 %711 }
0x122e   :  { %716 = vst.msk [vmem:[#allocation8 + $0xf] sm:$0x1] %vm168_vm7, %v712_v21 }
0x123a   :  { %v719_v22 = vpop.permute.xlu0 %718 }
0x123b   :  { %722 = vst.msk [vmem:[#allocation3] sm:$0x3] %vm38_vm0, %v719_v22 }
0x1243   :  { %v710_v37 = vpop.permute.xlu1 %709 }
0x1244   :  { %715 = vst.msk [vmem:[#allocation8 + $0x7] sm:$0x1] %vm168_vm7, %v710_v37 }
0x1245   :  { %740 = dma.vmem_to_hbm [thread:$0]  %s733_s30, 256, %s735_s7, [#allocation7], %s908_s20, %s908_s20, %s909_s21  }
0x124b   :  { %v725_v23 = vpop.permute.xlu1 %724 }
0x124c   :  { %727 = vst.msk [vmem:[#allocation4] sm:$0x3] %vm38_vm0, %v725_v23 }
0x124d   :  { %905 = dma.done.wait [#allocation7], 256  }
0x124e   :  { %906 = vsyncadd [#allocation7], 4294967040 }
0x124f   :  { %745 = vsyncpa [#allocation6], 1 }
0x1250   :  { %746 = vsyncpa [#allocation7], 1 }

</bundles_post_ra>
